<compile_context>
chip_gen: v7x
topology: tpu7x:2x2x1
jax: 0.10.0
libtpu: 0.0.40
codegen_flags: <defaults>
</compile_context>

<pallas_src>
import functools

import jax
import jax.numpy as jnp
import numpy as np
from jax import lax
from jax.experimental import pallas as pl
from jax.experimental.pallas import tpu as pltpu


def _layernorm(v, a, b, eps=1e-6):
    # Matches torch: std with Bessel correction (n-1); eps added to std, not var.
    # Exact divide (not the approx reciprocal) for strict parity with the ref.
    n = v.shape[-1]
    mean = jnp.mean(v, axis=-1, keepdims=True)
    var = jnp.sum((v - mean) ** 2, axis=-1, keepdims=True) * (1.0 / (n - 1))
    std = jnp.sqrt(var)
    return a * (v - mean) / (std + eps) + b


def _split_heads(x2d, heads, dh):
    # (T, heads*dh) -> (heads, T, dh) via static lane slices + leading-axis
    # stack: cheap layout ops only — every matmul stays lane-dense 2-D or
    # leading-batch-dim batched.
    return jnp.stack([x2d[:, h * dh:(h + 1) * dh] for h in range(heads)], axis=0)


def decoder_kernel(x_q_ref, x_kv_ref,
                   ln1_a_ref, ln1_b_ref,
                   wq_ref, bq_ref, wkv_ref, bkv_ref,
                   wproj_ref, bproj_ref,
                   ln2_a_ref, ln2_b_ref,
                   ff1_w_ref, ff1_b_ref, ff2_w_ref, ff2_b_ref,
                   o_ref, *, heads):
    tq, D = x_q_ref.shape
    S = x_kv_ref.shape[0]
    F = wq_ref.shape[1]
    dh = F // heads
    cdt = wq_ref.dtype            # matmul-operand dtype (f32 or bf16); acc is f32
    f32 = jnp.float32

    x_q = x_q_ref[...]            # residual stream stays f32
    x_kv = x_kv_ref[...]

    # ---------- sublayer 1: x + Attention(LayerNorm1(x)) ----------
    ln1_a = ln1_a_ref[...]
    ln1_b = ln1_b_ref[...]
    h_q = _layernorm(x_q, ln1_a, ln1_b)       # (tq, D) queries of this tile
    h_kv = _layernorm(x_kv, ln1_a, ln1_b)     # (S, D)  keys/values: full seq

    # Lane-dense projections: one (tq,D)x(D,F) matmul for Q and one fused
    # (S,D)x(D,2F) matmul for K|V.  Bias is folded before the single cast to
    # the compute dtype (no repeated bf16<->f32 round trips).
    q = jnp.dot(h_q.astype(cdt), wq_ref[...],
                preferred_element_type=f32) + bq_ref[...]
    kv = jnp.dot(h_kv.astype(cdt), wkv_ref[...],
                 preferred_element_type=f32) + bkv_ref[...]
    q_c = q.astype(cdt)
    k_c = kv[:, :F].astype(cdt)
    v_c = kv[:, F:].astype(cdt)

    # Head view only for the attention contractions.
    qh = _split_heads(q_c, heads, dh)          # (heads, tq, dh)
    kh = _split_heads(k_c, heads, dh)          # (heads, S,  dh)
    vh = _split_heads(v_c, heads, dh)          # (heads, S,  dh)

    # Scores for all heads at once: (heads, tq, S).  (The reference module does
    # not apply a 1/sqrt(dh) scale.)
    s = jnp.einsum("hqe,hke->hqk", qh, kh, preferred_element_type=f32)

    # Masking quirk of the reference: triu_indices(heads, S, offset=1), i.e.
    # only GLOBAL query rows r < heads are masked (at key cols c > r),
    # identically for every head.
    q0 = pl.program_id(0) * tq
    row = q0 + lax.broadcasted_iota(jnp.int32, (tq, S), 0)
    col = lax.broadcasted_iota(jnp.int32, (tq, S), 1)
    do_mask = (row < heads) & (col > row)              # (tq, S) bool slab
    s = jnp.where(do_mask[None], s - 1e9, s)

    # Softmax over keys; divide -> approx EUP reciprocal (free slot).
    s = s - jnp.max(s, axis=-1, keepdims=True)
    p = jnp.exp(s)
    p = p * pl.reciprocal(jnp.sum(p, axis=-1, keepdims=True), approx=True)

    o_h = jnp.einsum("hqk,hke->hqe", p.astype(cdt), vh,
                     preferred_element_type=f32)       # (heads, tq, dh)

    # concatenate_heads + projection: lane concat, then ONE lane-dense
    # (tq,F)x(F,F) matmul — the head-sum stays inside the MXU K dimension.
    o_cat = jnp.concatenate([o_h[h] for h in range(heads)], axis=-1)   # (tq, F)
    z = jnp.dot(o_cat.astype(cdt), wproj_ref[...],
                preferred_element_type=f32) + bproj_ref[...]
    x1 = x_q + z

    # ---------- sublayer 2: x + FeedForward(LayerNorm2(x)) ----------
    h2 = _layernorm(x1, ln2_a_ref[...], ln2_b_ref[...])
    f1 = jnp.dot(h2.astype(cdt), ff1_w_ref[...],
                 preferred_element_type=f32) + ff1_b_ref[...]
    f1 = jnp.maximum(f1, 0.0)                          # ReLU
    f2 = jnp.dot(f1.astype(cdt), ff2_w_ref[...],
                 preferred_element_type=f32) + ff2_b_ref[...]

    o_ref[...] = (x1 + f2).astype(o_ref.dtype)
    # TODO(synk): for long sequences, stream K/V flash-style (second grid axis +
    # online-softmax scratch) instead of materializing (heads, tq, S) scores.


def decoder_forward(x, params, heads, *, compute_dtype=jnp.float32, seq_block=None):
    S, D = x.shape
    F = params["wq_w"].shape[1]
    assert F % heads == 0

    # Query tiling over the sequence.  Default: single tile — on 1-TensorCore
    # chips (v5e/v6e) a "parallel" grid is just a serial loop that recomputes
    # LN1(x)/K/V per tile.  Tile only on v7x (2 TCs) or when VMEM forces it;
    # then pick tq as a multiple of 256 (v6e/v7x MXU) / 128 (v5e).
    tq = S if seq_block is None else seq_block
    assert S % tq == 0 and (tq == S or tq % 8 == 0), (S, tq)
    grid = (S // tq,)

    cdt = jnp.dtype(compute_dtype)

    # Lane-dense weight layouts (lane = F / 2F / 4F / D), no head splitting:
    # minimal resident VMEM and the MXU stays fully fed.  K and V weights are
    # fused so the full-sequence K|V projection is a single matmul.
    wkv = jnp.concatenate([params["wk_w"], params["wv_w"]], axis=1).astype(cdt)
    bkv = jnp.concatenate([params["wk_b"], params["wv_b"]], axis=1)

    kernel_params = [
        params["ln1_a"], params["ln1_b"],
        params["wq_w"].astype(cdt), params["wq_b"],
        wkv, bkv,
        params["proj_w"].astype(cdt), params["proj_b"],
        params["ln2_a"], params["ln2_b"],
        params["ff1_w"].astype(cdt), params["ff1_b"],
        params["ff2_w"].astype(cdt), params["ff2_b"],
    ]
    # TODO(synk): on v7x, fp8 weights (+ per-tensor scales) for proj/ff1/ff2
    # would halve resident weight VMEM again and ~2x FF matmul throughput.

    def resident(a):   # full-array block, constant index_map -> stays in VMEM
        nd = a.ndim
        return pl.BlockSpec(a.shape, lambda i, _nd=nd: (0,) * _nd)
        # TODO(synk): single-buffer these resident weights (pl.Buffered(1)
        # pipeline_mode) once safe in the standard pallas_call pipeline, to
        # halve their VMEM footprint on v7x's 64 MiB VMEM.

    in_specs = [
        pl.BlockSpec((tq, D), lambda i: (i, 0)),   # x: query tile / residual
        pl.BlockSpec((S, D), lambda i: (0, 0)),    # x: full sequence for K/V
    ] + [resident(a) for a in kernel_params]

    # Advisory cost hint: includes per-tile K/V recompute and output write-back.
    g = S // tq
    flops = int(2 * S * D * F                 # Q projection (over all tiles)
                + g * 2 * S * D * 2 * F       # K|V projection, recomputed per tile
                + 4 * S * S * F               # scores + attn @ V
                + 2 * S * F * F               # output projection
                + 2 * S * F * 4 * F           # ff1
                + 2 * S * 4 * F * D)          # ff2
    bytes_accessed = int(2 * x.size * x.dtype.itemsize          # x (tiles + K/V)
                         + sum(int(np.prod(a.shape)) * a.dtype.itemsize
                               for a in kernel_params)
                         + x.size * x.dtype.itemsize)           # output write
    cost = pl.CostEstimate(flops=flops, transcendentals=heads * S * S,
                           bytes_accessed=bytes_accessed)

    # VMEM limit sized per generation: ~5/8 of physical capacity, capped at
    # 64 MiB (v5e/v6e: 128 MiB physical -> 64 MiB; v7x: 64 MiB -> 40 MiB).
    try:
        vmem_cap = int(pltpu.get_tpu_info().vmem_capacity_bytes)
    except Exception:
        vmem_cap = 64 * 1024 * 1024
    vmem_limit = min(vmem_cap * 5 // 8, 64 * 1024 * 1024)

    return pl.pallas_call(
        functools.partial(decoder_kernel, heads=heads),
        out_shape=jax.ShapeDtypeStruct(x.shape, x.dtype),
        grid=grid,
        in_specs=in_specs,
        out_specs=pl.BlockSpec((tq, D), lambda i: (i, 0)),
        compiler_params=pltpu.CompilerParams(
            dimension_semantics=("parallel",),
            vmem_limit_bytes=vmem_limit,
        ),
        cost_estimate=cost,
    )(x, x, *kernel_params)
    # TODO(synk): at the toy D=F=32 the output last dim (<128) still hits masked
    # stores; batch sequences/layers into a lane-dense slab for production use.


# ---------------- pure-JAX reference (for correctness check) ----------------
def decoder_ref(x, p, heads):
    def ln(v, a, b, eps=1e-6):
        n = v.shape[-1]
        mean = v.mean(-1, keepdims=True)
        std = jnp.sqrt(((v - mean) ** 2).sum(-1, keepdims=True) / (n - 1))
        return a * (v - mean) / (std + eps) + b

    h = ln(x, p["ln1_a"], p["ln1_b"])
    q = h @ p["wq_w"] + p["wq_b"]
    k = h @ p["wk_w"] + p["wk_b"]
    v = h @ p["wv_w"] + p["wv_b"]
    S, F = q.shape
    dh = F // heads
    qh = q.reshape(S, heads, dh).transpose(1, 0, 2)
    kh = k.reshape(S, heads, dh).transpose(1, 0, 2)
    vh = v.reshape(S, heads, dh).transpose(1, 0, 2)
    s = jnp.einsum("hqd,hkd->hqk", qh, kh)
    row = jnp.arange(S)[:, None]
    col = jnp.arange(S)[None, :]
    mask = jnp.where((row < heads) & (col > row), -1e9, 0.0)
    att = jax.nn.softmax(s + mask[None], axis=-1)
    o = jnp.einsum("hqk,hkd->hqd", att, vh).transpose(1, 0, 2).reshape(S, F)
    x = x + (o @ p["proj_w"] + p["proj_b"])
    h2 = ln(x, p["ln2_a"], p["ln2_b"])
    f1 = jnp.maximum(h2 @ p["ff1_w"] + p["ff1_b"], 0.0)
    f2 = f1 @ p["ff2_w"] + p["ff2_b"]
    return x + f2


def init_params(key, d, f):
    keys = jax.random.split(key, 6)

    def lin(k, fin, fout):
        kw, kb = jax.random.split(k)
        w = jax.random.normal(kw, (fin, fout), jnp.float32) / np.sqrt(fin)
        b = jax.random.normal(kb, (1, fout), jnp.float32) * 0.02
        return w, b

    wq_w, wq_b = lin(keys[0], d, f)
    wk_w, wk_b = lin(keys[1], d, f)
    wv_w, wv_b = lin(keys[2], d, f)
    proj_w, proj_b = lin(keys[3], f, f)
    ff1_w, ff1_b = lin(keys[4], f, 4 * f)
    ff2_w, ff2_b = lin(keys[5], 4 * f, d)
    return dict(
        ln1_a=jnp.ones((1, f), jnp.float32), ln1_b=jnp.zeros((1, f), jnp.float32),
        ln2_a=jnp.ones((1, d), jnp.float32), ln2_b=jnp.zeros((1, d), jnp.float32),
        wq_w=wq_w, wq_b=wq_b, wk_w=wk_w, wk_b=wk_b, wv_w=wv_w, wv_b=wv_b,
        proj_w=proj_w, proj_b=proj_b,
        ff1_w=ff1_w, ff1_b=ff1_b, ff2_w=ff2_w, ff2_b=ff2_b,
    )


if __name__ == "__main__":
    # Residual connections in the reference module require d == f.
    S, D, F, HEADS = 16, 32, 32, 4
    key = jax.random.PRNGKey(0)
    kx, kp = jax.random.split(key)
    x = jax.random.normal(kx, (S, D), jnp.float32)
    params = init_params(kp, D, F)

    ref = decoder_ref(x, params, HEADS)

    # Default config: f32 operands, single sequence tile (recommended on v5e/v6e).
    out_f32 = decoder_forward(x, params, HEADS)
    jax.block_until_ready(out_f32)
    np.testing.assert_allclose(np.asarray(out_f32), np.asarray(ref),
                               rtol=1e-2, atol=1e-2)

    # Sequence tiled over a 2-step "parallel" grid (v7x-style megacore split);
    # exercises the program_id-dependent masking path.
    out_tiled = decoder_forward(x, params, HEADS, seq_block=8)
    jax.block_until_ready(out_tiled)
    np.testing.assert_allclose(np.asarray(out_tiled), np.asarray(ref),
                               rtol=1e-2, atol=1e-2)

    # bf16 matmul operands (f32 accumulation) — the fast path on v6e/v7x.
    out_bf16 = decoder_forward(x, params, HEADS, compute_dtype=jnp.bfloat16)
    jax.block_until_ready(out_bf16)
    np.testing.assert_allclose(np.asarray(out_bf16), np.asarray(ref),
                               rtol=1e-1, atol=1e-1)

    print("KERNEL_OK")
</pallas_src>

<mosaic_0001>
module attributes {stable_mosaic.version = 11 : i64} {
  func.func @decoder_kernel(%arg0: i32, %arg1: memref<16x32xf32, #tpu.memory_space<vmem>>, %arg2: memref<16x32xf32, #tpu.memory_space<vmem>>, %arg3: memref<1x32xf32, #tpu.memory_space<vmem>>, %arg4: memref<1x32xf32, #tpu.memory_space<vmem>>, %arg5: memref<32x32xf32, #tpu.memory_space<vmem>>, %arg6: memref<1x32xf32, #tpu.memory_space<vmem>>, %arg7: memref<32x64xf32, #tpu.memory_space<vmem>>, %arg8: memref<1x64xf32, #tpu.memory_space<vmem>>, %arg9: memref<32x32xf32, #tpu.memory_space<vmem>>, %arg10: memref<1x32xf32, #tpu.memory_space<vmem>>, %arg11: memref<1x32xf32, #tpu.memory_space<vmem>>, %arg12: memref<1x32xf32, #tpu.memory_space<vmem>>, %arg13: memref<32x128xf32, #tpu.memory_space<vmem>>, %arg14: memref<1x128xf32, #tpu.memory_space<vmem>>, %arg15: memref<128x32xf32, #tpu.memory_space<vmem>>, %arg16: memref<1x32xf32, #tpu.memory_space<vmem>>, %arg17: memref<16x32xf32, #tpu.memory_space<vmem>>) attributes {dimension_semantics = [#tpu.dimension_semantics<parallel>], iteration_bounds = array<i64: 1>, scalar_prefetch = 0 : i64, scratch_operands = 0 : i64, tpu.core_type = #tpu.core_type<tc>, window_params = [{transform_indices = @transform_0, window_bounds = array<i64: 16, 32>}, {pipeline_mode = #tpu.pipeline_mode<synchronous>, transform_indices = @transform_1, window_bounds = array<i64: 16, 32>}, {pipeline_mode = #tpu.pipeline_mode<synchronous>, transform_indices = @transform_2, window_bounds = array<i64: 1, 32>}, {pipeline_mode = #tpu.pipeline_mode<synchronous>, transform_indices = @transform_3, window_bounds = array<i64: 1, 32>}, {pipeline_mode = #tpu.pipeline_mode<synchronous>, transform_indices = @transform_4, window_bounds = array<i64: 32, 32>}, {pipeline_mode = #tpu.pipeline_mode<synchronous>, transform_indices = @transform_5, window_bounds = array<i64: 1, 32>}, {pipeline_mode = #tpu.pipeline_mode<synchronous>, transform_indices = @transform_6, window_bounds = array<i64: 32, 64>}, {pipeline_mode = #tpu.pipeline_mode<synchronous>, transform_indices = @transform_7, window_bounds = array<i64: 1, 64>}, {pipeline_mode = #tpu.pipeline_mode<synchronous>, transform_indices = @transform_8, window_bounds = array<i64: 32, 32>}, {pipeline_mode = #tpu.pipeline_mode<synchronous>, transform_indices = @transform_9, window_bounds = array<i64: 1, 32>}, {pipeline_mode = #tpu.pipeline_mode<synchronous>, transform_indices = @transform_10, window_bounds = array<i64: 1, 32>}, {pipeline_mode = #tpu.pipeline_mode<synchronous>, transform_indices = @transform_11, window_bounds = array<i64: 1, 32>}, {pipeline_mode = #tpu.pipeline_mode<synchronous>, transform_indices = @transform_12, window_bounds = array<i64: 32, 128>}, {pipeline_mode = #tpu.pipeline_mode<synchronous>, transform_indices = @transform_13, window_bounds = array<i64: 1, 128>}, {pipeline_mode = #tpu.pipeline_mode<synchronous>, transform_indices = @transform_14, window_bounds = array<i64: 128, 32>}, {pipeline_mode = #tpu.pipeline_mode<synchronous>, transform_indices = @transform_15, window_bounds = array<i64: 1, 32>}, {transform_indices = @transform_16, window_bounds = array<i64: 16, 32>}]} {
    %c0 = arith.constant 0 : index
    %c0_0 = arith.constant 0 : index
    %0 = vector.load %arg1[%c0, %c0_0] : memref<16x32xf32, #tpu.memory_space<vmem>>, vector<16x32xf32>
    %c0_1 = arith.constant 0 : index
    %c0_2 = arith.constant 0 : index
    %1 = vector.load %arg2[%c0_1, %c0_2] : memref<16x32xf32, #tpu.memory_space<vmem>>, vector<16x32xf32>
    %c0_3 = arith.constant 0 : index
    %c0_4 = arith.constant 0 : index
    %2 = vector.load %arg3[%c0_3, %c0_4] : memref<1x32xf32, #tpu.memory_space<vmem>>, vector<1x32xf32>
    %c0_5 = arith.constant 0 : index
    %c0_6 = arith.constant 0 : index
    %3 = vector.load %arg4[%c0_5, %c0_6] : memref<1x32xf32, #tpu.memory_space<vmem>>, vector<1x32xf32>
    %cst = arith.constant dense<0.000000e+00> : vector<16xf32>
    %4 = vector.multi_reduction <add>, %0, %cst [1] : vector<16x32xf32> to vector<16xf32>
    %5 = vector.shape_cast %4 : vector<16xf32> to vector<16x1xf32>
    %cst_7 = arith.constant 3.200000e+01 : f32
    %6 = vector.broadcast %cst_7 : f32 to vector<16x1xf32>
    %7 = arith.divf %5, %6 : vector<16x1xf32>
    %8 = vector.broadcast %7 : vector<16x1xf32> to vector<16x32xf32>
    %9 = arith.subf %0, %8 : vector<16x32xf32>
    %10 = arith.mulf %9, %9 : vector<16x32xf32>
    %cst_8 = arith.constant dense<0.000000e+00> : vector<16xf32>
    %11 = vector.multi_reduction <add>, %10, %cst_8 [1] : vector<16x32xf32> to vector<16xf32>
    %12 = vector.shape_cast %11 : vector<16xf32> to vector<16x1xf32>
    %cst_9 = arith.constant 0.0322580636 : f32
    %13 = vector.broadcast %cst_9 : f32 to vector<16x1xf32>
    %14 = arith.mulf %12, %13 : vector<16x1xf32>
    %15 = math.sqrt %14 : vector<16x1xf32>
    %16 = vector.broadcast %7 : vector<16x1xf32> to vector<16x32xf32>
    %17 = arith.subf %0, %16 : vector<16x32xf32>
    %18 = vector.broadcast %2 : vector<1x32xf32> to vector<16x32xf32>
    %19 = arith.mulf %18, %17 : vector<16x32xf32>
    %cst_10 = arith.constant 9.99999997E-7 : f32
    %20 = vector.broadcast %cst_10 : f32 to vector<16x1xf32>
    %21 = arith.addf %15, %20 : vector<16x1xf32>
    %22 = vector.broadcast %21 : vector<16x1xf32> to vector<16x32xf32>
    %23 = arith.divf %19, %22 : vector<16x32xf32>
    %24 = vector.broadcast %3 : vector<1x32xf32> to vector<16x32xf32>
    %25 = arith.addf %23, %24 : vector<16x32xf32>
    %cst_11 = arith.constant dense<0.000000e+00> : vector<16xf32>
    %26 = vector.multi_reduction <add>, %1, %cst_11 [1] : vector<16x32xf32> to vector<16xf32>
    %27 = vector.shape_cast %26 : vector<16xf32> to vector<16x1xf32>
    %cst_12 = arith.constant 3.200000e+01 : f32
    %28 = vector.broadcast %cst_12 : f32 to vector<16x1xf32>
    %29 = arith.divf %27, %28 : vector<16x1xf32>
    %30 = vector.broadcast %29 : vector<16x1xf32> to vector<16x32xf32>
    %31 = arith.subf %1, %30 : vector<16x32xf32>
    %32 = arith.mulf %31, %31 : vector<16x32xf32>
    %cst_13 = arith.constant dense<0.000000e+00> : vector<16xf32>
    %33 = vector.multi_reduction <add>, %32, %cst_13 [1] : vector<16x32xf32> to vector<16xf32>
    %34 = vector.shape_cast %33 : vector<16xf32> to vector<16x1xf32>
    %cst_14 = arith.constant 0.0322580636 : f32
    %35 = vector.broadcast %cst_14 : f32 to vector<16x1xf32>
    %36 = arith.mulf %34, %35 : vector<16x1xf32>
    %37 = math.sqrt %36 : vector<16x1xf32>
    %38 = vector.broadcast %29 : vector<16x1xf32> to vector<16x32xf32>
    %39 = arith.subf %1, %38 : vector<16x32xf32>
    %40 = vector.broadcast %2 : vector<1x32xf32> to vector<16x32xf32>
    %41 = arith.mulf %40, %39 : vector<16x32xf32>
    %cst_15 = arith.constant 9.99999997E-7 : f32
    %42 = vector.broadcast %cst_15 : f32 to vector<16x1xf32>
    %43 = arith.addf %37, %42 : vector<16x1xf32>
    %44 = vector.broadcast %43 : vector<16x1xf32> to vector<16x32xf32>
    %45 = arith.divf %41, %44 : vector<16x32xf32>
    %46 = vector.broadcast %3 : vector<1x32xf32> to vector<16x32xf32>
    %47 = arith.addf %45, %46 : vector<16x32xf32>
    %c0_16 = arith.constant 0 : index
    %c0_17 = arith.constant 0 : index
    %48 = vector.load %arg5[%c0_16, %c0_17] : memref<32x32xf32, #tpu.memory_space<vmem>>, vector<32x32xf32>
    %cst_18 = arith.constant dense<0.000000e+00> : vector<16x32xf32>
    %49 = tpu.matmul %25, %48, %cst_18 {dimension_numbers = #tpu.dot_dimension_numbers<[1], [0], [0], [1], [0, 0, 1, 1], [], []>} : vector<16x32xf32>, vector<32x32xf32>, vector<16x32xf32> -> vector<16x32xf32>
    %c0_19 = arith.constant 0 : index
    %c0_20 = arith.constant 0 : index
    %50 = vector.load %arg6[%c0_19, %c0_20] : memref<1x32xf32, #tpu.memory_space<vmem>>, vector<1x32xf32>
    %51 = vector.broadcast %50 : vector<1x32xf32> to vector<16x32xf32>
    %52 = arith.addf %49, %51 : vector<16x32xf32>
    %c0_21 = arith.constant 0 : index
    %c0_22 = arith.constant 0 : index
    %53 = vector.load %arg7[%c0_21, %c0_22] : memref<32x64xf32, #tpu.memory_space<vmem>>, vector<32x64xf32>
    %cst_23 = arith.constant dense<0.000000e+00> : vector<16x64xf32>
    %54 = tpu.matmul %47, %53, %cst_23 {dimension_numbers = #tpu.dot_dimension_numbers<[1], [0], [0], [1], [0, 0, 1, 1], [], []>} : vector<16x32xf32>, vector<32x64xf32>, vector<16x64xf32> -> vector<16x64xf32>
    %c0_24 = arith.constant 0 : index
    %c0_25 = arith.constant 0 : index
    %55 = vector.load %arg8[%c0_24, %c0_25] : memref<1x64xf32, #tpu.memory_space<vmem>>, vector<1x64xf32>
    %56 = vector.broadcast %55 : vector<1x64xf32> to vector<16x64xf32>
    %57 = arith.addf %54, %56 : vector<16x64xf32>
    %58 = vector.extract_strided_slice %57 {offsets = [0, 0], sizes = [16, 32], strides = [1, 1]} : vector<16x64xf32> to vector<16x32xf32>
    %59 = vector.extract_strided_slice %57 {offsets = [0, 32], sizes = [16, 32], strides = [1, 1]} : vector<16x64xf32> to vector<16x32xf32>
    %60 = vector.extract_strided_slice %52 {offsets = [0, 0], sizes = [16, 8], strides = [1, 1]} : vector<16x32xf32> to vector<16x8xf32>
    %61 = vector.extract_strided_slice %52 {offsets = [0, 8], sizes = [16, 8], strides = [1, 1]} : vector<16x32xf32> to vector<16x8xf32>
    %62 = vector.extract_strided_slice %52 {offsets = [0, 16], sizes = [16, 8], strides = [1, 1]} : vector<16x32xf32> to vector<16x8xf32>
    %63 = vector.extract_strided_slice %52 {offsets = [0, 24], sizes = [16, 8], strides = [1, 1]} : vector<16x32xf32> to vector<16x8xf32>
    %64 = vector.shape_cast %60 : vector<16x8xf32> to vector<1x16x8xf32>
    %65 = vector.shape_cast %61 : vector<16x8xf32> to vector<1x16x8xf32>
    %66 = vector.shape_cast %62 : vector<16x8xf32> to vector<1x16x8xf32>
    %67 = vector.shape_cast %63 : vector<16x8xf32> to vector<1x16x8xf32>
    %68 = tpu.concatenate %64, %65, %66, %67 in 0 : vector<1x16x8xf32>, vector<1x16x8xf32>, vector<1x16x8xf32>, vector<1x16x8xf32> -> vector<4x16x8xf32>
    %69 = vector.extract_strided_slice %58 {offsets = [0, 0], sizes = [16, 8], strides = [1, 1]} : vector<16x32xf32> to vector<16x8xf32>
    %70 = vector.extract_strided_slice %58 {offsets = [0, 8], sizes = [16, 8], strides = [1, 1]} : vector<16x32xf32> to vector<16x8xf32>
    %71 = vector.extract_strided_slice %58 {offsets = [0, 16], sizes = [16, 8], strides = [1, 1]} : vector<16x32xf32> to vector<16x8xf32>
    %72 = vector.extract_strided_slice %58 {offsets = [0, 24], sizes = [16, 8], strides = [1, 1]} : vector<16x32xf32> to vector<16x8xf32>
    %73 = vector.shape_cast %69 : vector<16x8xf32> to vector<1x16x8xf32>
    %74 = vector.shape_cast %70 : vector<16x8xf32> to vector<1x16x8xf32>
    %75 = vector.shape_cast %71 : vector<16x8xf32> to vector<1x16x8xf32>
    %76 = vector.shape_cast %72 : vector<16x8xf32> to vector<1x16x8xf32>
    %77 = tpu.concatenate %73, %74, %75, %76 in 0 : vector<1x16x8xf32>, vector<1x16x8xf32>, vector<1x16x8xf32>, vector<1x16x8xf32> -> vector<4x16x8xf32>
    %78 = vector.extract_strided_slice %59 {offsets = [0, 0], sizes = [16, 8], strides = [1, 1]} : vector<16x32xf32> to vector<16x8xf32>
    %79 = vector.extract_strided_slice %59 {offsets = [0, 8], sizes = [16, 8], strides = [1, 1]} : vector<16x32xf32> to vector<16x8xf32>
    %80 = vector.extract_strided_slice %59 {offsets = [0, 16], sizes = [16, 8], strides = [1, 1]} : vector<16x32xf32> to vector<16x8xf32>
    %81 = vector.extract_strided_slice %59 {offsets = [0, 24], sizes = [16, 8], strides = [1, 1]} : vector<16x32xf32> to vector<16x8xf32>
    %82 = vector.shape_cast %78 : vector<16x8xf32> to vector<1x16x8xf32>
    %83 = vector.shape_cast %79 : vector<16x8xf32> to vector<1x16x8xf32>
    %84 = vector.shape_cast %80 : vector<16x8xf32> to vector<1x16x8xf32>
    %85 = vector.shape_cast %81 : vector<16x8xf32> to vector<1x16x8xf32>
    %86 = tpu.concatenate %82, %83, %84, %85 in 0 : vector<1x16x8xf32>, vector<1x16x8xf32>, vector<1x16x8xf32>, vector<1x16x8xf32> -> vector<4x16x8xf32>
    "tpu.trace_start"() <{level = 10 : i32, message = "hqe,hke->hqk"}> : () -> ()
    %cst_26 = arith.constant dense<0.000000e+00> : vector<4x16x16xf32>
    %87 = tpu.matmul %68, %77, %cst_26 {dimension_numbers = #tpu.dot_dimension_numbers<[2], [2], [1], [1], [0, 0, 0, 1, 1, 1], [0], [0]>} : vector<4x16x8xf32>, vector<4x16x8xf32>, vector<4x16x16xf32> -> vector<4x16x16xf32>
    "tpu.trace_stop"() : () -> ()
    %c16_i32 = arith.constant 16 : i32
    %88 = arith.muli %arg0, %c16_i32 : i32
    %89 = tpu.iota {dimensions = array<i32: 0>} : vector<16x16xi32>
    %90 = vector.broadcast %88 : i32 to vector<16x16xi32>
    %91 = arith.addi %90, %89 : vector<16x16xi32>
    %92 = tpu.iota {dimensions = array<i32: 1>} : vector<16x16xi32>
    %c4_i32 = arith.constant 4 : i32
    %93 = vector.broadcast %c4_i32 : i32 to vector<16x16xi32>
    %94 = arith.cmpi slt, %91, %93 : vector<16x16xi32>
    %95 = arith.cmpi sgt, %92, %91 : vector<16x16xi32>
    %96 = arith.andi %94, %95 : vector<16x16xi1>
    %97 = vector.shape_cast %96 : vector<16x16xi1> to vector<1x16x16xi1>
    %cst_27 = arith.constant 1.000000e+09 : f32
    %98 = vector.broadcast %cst_27 : f32 to vector<4x16x16xf32>
    %99 = arith.subf %87, %98 : vector<4x16x16xf32>
    %100 = vector.shape_cast %97 : vector<1x16x16xi1> to vector<1x16x16xi1>
    %101 = vector.broadcast %100 : vector<1x16x16xi1> to vector<4x16x16xi1>
    %102 = arith.select %101, %99, %87 : vector<4x16x16xi1>, vector<4x16x16xf32>
    %cst_28 = arith.constant dense<0xFF800000> : vector<4x16xf32>
    %103 = vector.multi_reduction <maximumf>, %102, %cst_28 [2] : vector<4x16x16xf32> to vector<4x16xf32>
    %104 = vector.shape_cast %103 : vector<4x16xf32> to vector<4x16x1xf32>
    %105 = vector.broadcast %104 : vector<4x16x1xf32> to vector<4x16x16xf32>
    %106 = arith.subf %102, %105 : vector<4x16x16xf32>
    %107 = math.exp %106 : vector<4x16x16xf32>
    %cst_29 = arith.constant dense<0.000000e+00> : vector<4x16xf32>
    %108 = vector.multi_reduction <add>, %107, %cst_29 [2] : vector<4x16x16xf32> to vector<4x16xf32>
    %109 = vector.shape_cast %108 : vector<4x16xf32> to vector<4x16x1xf32>
    %110 = tpu.reciprocal %109 {approx = true} : vector<4x16x1xf32> -> vector<4x16x1xf32>
    %111 = vector.broadcast %110 : vector<4x16x1xf32> to vector<4x16x16xf32>
    %112 = arith.mulf %107, %111 : vector<4x16x16xf32>
    "tpu.trace_start"() <{level = 10 : i32, message = "hqk,hke->hqe"}> : () -> ()
    %cst_30 = arith.constant dense<0.000000e+00> : vector<4x16x8xf32>
    %113 = tpu.matmul %112, %86, %cst_30 {dimension_numbers = #tpu.dot_dimension_numbers<[2], [1], [1], [2], [0, 0, 0, 1, 1, 2], [0], [0]>} : vector<4x16x16xf32>, vector<4x16x8xf32>, vector<4x16x8xf32> -> vector<4x16x8xf32>
    "tpu.trace_stop"() : () -> ()
    %114 = vector.extract_strided_slice %113 {offsets = [0, 0, 0], sizes = [1, 16, 8], strides = [1, 1, 1]} : vector<4x16x8xf32> to vector<1x16x8xf32>
    %115 = vector.shape_cast %114 : vector<1x16x8xf32> to vector<16x8xf32>
    %116 = vector.extract_strided_slice %113 {offsets = [1, 0, 0], sizes = [1, 16, 8], strides = [1, 1, 1]} : vector<4x16x8xf32> to vector<1x16x8xf32>
    %117 = vector.shape_cast %116 : vector<1x16x8xf32> to vector<16x8xf32>
    %118 = vector.extract_strided_slice %113 {offsets = [2, 0, 0], sizes = [1, 16, 8], strides = [1, 1, 1]} : vector<4x16x8xf32> to vector<1x16x8xf32>
    %119 = vector.shape_cast %118 : vector<1x16x8xf32> to vector<16x8xf32>
    %120 = vector.extract_strided_slice %113 {offsets = [3, 0, 0], sizes = [1, 16, 8], strides = [1, 1, 1]} : vector<4x16x8xf32> to vector<1x16x8xf32>
    %121 = vector.shape_cast %120 : vector<1x16x8xf32> to vector<16x8xf32>
    %122 = tpu.concatenate %115, %117, %119, %121 in 1 : vector<16x8xf32>, vector<16x8xf32>, vector<16x8xf32>, vector<16x8xf32> -> vector<16x32xf32>
    %c0_31 = arith.constant 0 : index
    %c0_32 = arith.constant 0 : index
    %123 = vector.load %arg9[%c0_31, %c0_32] : memref<32x32xf32, #tpu.memory_space<vmem>>, vector<32x32xf32>
    %cst_33 = arith.constant dense<0.000000e+00> : vector<16x32xf32>
    %124 = tpu.matmul %122, %123, %cst_33 {dimension_numbers = #tpu.dot_dimension_numbers<[1], [0], [0], [1], [0, 0, 1, 1], [], []>} : vector<16x32xf32>, vector<32x32xf32>, vector<16x32xf32> -> vector<16x32xf32>
    %c0_34 = arith.constant 0 : index
    %c0_35 = arith.constant 0 : index
    %125 = vector.load %arg10[%c0_34, %c0_35] : memref<1x32xf32, #tpu.memory_space<vmem>>, vector<1x32xf32>
    %126 = vector.broadcast %125 : vector<1x32xf32> to vector<16x32xf32>
    %127 = arith.addf %124, %126 : vector<16x32xf32>
    %128 = arith.addf %0, %127 : vector<16x32xf32>
    %c0_36 = arith.constant 0 : index
    %c0_37 = arith.constant 0 : index
    %129 = vector.load %arg11[%c0_36, %c0_37] : memref<1x32xf32, #tpu.memory_space<vmem>>, vector<1x32xf32>
    %c0_38 = arith.constant 0 : index
    %c0_39 = arith.constant 0 : index
    %130 = vector.load %arg12[%c0_38, %c0_39] : memref<1x32xf32, #tpu.memory_space<vmem>>, vector<1x32xf32>
    %cst_40 = arith.constant dense<0.000000e+00> : vector<16xf32>
    %131 = vector.multi_reduction <add>, %128, %cst_40 [1] : vector<16x32xf32> to vector<16xf32>
    %132 = vector.shape_cast %131 : vector<16xf32> to vector<16x1xf32>
    %cst_41 = arith.constant 3.200000e+01 : f32
    %133 = vector.broadcast %cst_41 : f32 to vector<16x1xf32>
    %134 = arith.divf %132, %133 : vector<16x1xf32>
    %135 = vector.broadcast %134 : vector<16x1xf32> to vector<16x32xf32>
    %136 = arith.subf %128, %135 : vector<16x32xf32>
    %137 = arith.mulf %136, %136 : vector<16x32xf32>
    %cst_42 = arith.constant dense<0.000000e+00> : vector<16xf32>
    %138 = vector.multi_reduction <add>, %137, %cst_42 [1] : vector<16x32xf32> to vector<16xf32>
    %139 = vector.shape_cast %138 : vector<16xf32> to vector<16x1xf32>
    %cst_43 = arith.constant 0.0322580636 : f32
    %140 = vector.broadcast %cst_43 : f32 to vector<16x1xf32>
    %141 = arith.mulf %139, %140 : vector<16x1xf32>
    %142 = math.sqrt %141 : vector<16x1xf32>
    %143 = vector.broadcast %134 : vector<16x1xf32> to vector<16x32xf32>
    %144 = arith.subf %128, %143 : vector<16x32xf32>
    %145 = vector.broadcast %129 : vector<1x32xf32> to vector<16x32xf32>
    %146 = arith.mulf %145, %144 : vector<16x32xf32>
    %cst_44 = arith.constant 9.99999997E-7 : f32
    %147 = vector.broadcast %cst_44 : f32 to vector<16x1xf32>
    %148 = arith.addf %142, %147 : vector<16x1xf32>
    %149 = vector.broadcast %148 : vector<16x1xf32> to vector<16x32xf32>
    %150 = arith.divf %146, %149 : vector<16x32xf32>
    %151 = vector.broadcast %130 : vector<1x32xf32> to vector<16x32xf32>
    %152 = arith.addf %150, %151 : vector<16x32xf32>
    %c0_45 = arith.constant 0 : index
    %c0_46 = arith.constant 0 : index
    %153 = vector.load %arg13[%c0_45, %c0_46] : memref<32x128xf32, #tpu.memory_space<vmem>>, vector<32x128xf32>
    %cst_47 = arith.constant dense<0.000000e+00> : vector<16x128xf32>
    %154 = tpu.matmul %152, %153, %cst_47 {dimension_numbers = #tpu.dot_dimension_numbers<[1], [0], [0], [1], [0, 0, 1, 1], [], []>} : vector<16x32xf32>, vector<32x128xf32>, vector<16x128xf32> -> vector<16x128xf32>
    %c0_48 = arith.constant 0 : index
    %c0_49 = arith.constant 0 : index
    %155 = vector.load %arg14[%c0_48, %c0_49] : memref<1x128xf32, #tpu.memory_space<vmem>>, vector<1x128xf32>
    %156 = vector.broadcast %155 : vector<1x128xf32> to vector<16x128xf32>
    %157 = arith.addf %154, %156 : vector<16x128xf32>
    %cst_50 = arith.constant 0.000000e+00 : f32
    %158 = vector.broadcast %cst_50 : f32 to vector<16x128xf32>
    %159 = arith.maximumf %157, %158 : vector<16x128xf32>
    %c0_51 = arith.constant 0 : index
    %c0_52 = arith.constant 0 : index
    %160 = vector.load %arg15[%c0_51, %c0_52] : memref<128x32xf32, #tpu.memory_space<vmem>>, vector<128x32xf32>
    %cst_53 = arith.constant dense<0.000000e+00> : vector<16x32xf32>
    %161 = tpu.matmul %159, %160, %cst_53 {dimension_numbers = #tpu.dot_dimension_numbers<[1], [0], [0], [1], [0, 0, 1, 1], [], []>} : vector<16x128xf32>, vector<128x32xf32>, vector<16x32xf32> -> vector<16x32xf32>
    %c0_54 = arith.constant 0 : index
    %c0_55 = arith.constant 0 : index
    %162 = vector.load %arg16[%c0_54, %c0_55] : memref<1x32xf32, #tpu.memory_space<vmem>>, vector<1x32xf32>
    %163 = vector.broadcast %162 : vector<1x32xf32> to vector<16x32xf32>
    %164 = arith.addf %161, %163 : vector<16x32xf32>
    %165 = arith.addf %128, %164 : vector<16x32xf32>
    %c0_56 = arith.constant 0 : index
    %c0_57 = arith.constant 0 : index
    %166 = vector.load %arg17[%c0_56, %c0_57] : memref<16x32xf32, #tpu.memory_space<vmem>>, vector<16x32xf32>
    tpu.vector_store %arg17[%c0_56, %c0_57], %165 {strides = array<i32>} : memref<16x32xf32, #tpu.memory_space<vmem>>, vector<16x32xf32>,
    return
  }
  func.func @transform_0(%arg0: i32) -> (i32, i32) {
    %c0_i32 = arith.constant 0 : i32
    %c0_i32_0 = arith.constant 0 : i32
    return %arg0, %c0_i32 : i32, i32
  }
  func.func @transform_1(%arg0: i32) -> (i32, i32) {
    %c0_i32 = arith.constant 0 : i32
    %c0_i32_0 = arith.constant 0 : i32
    %c0_i32_1 = arith.constant 0 : i32
    return %c0_i32, %c0_i32_0 : i32, i32
  }
  func.func @transform_2(%arg0: i32) -> (i32, i32) {
    %c0_i32 = arith.constant 0 : i32
    %c0_i32_0 = arith.constant 0 : i32
    %c0_i32_1 = arith.constant 0 : i32
    return %c0_i32, %c0_i32_0 : i32, i32
  }
  func.func @transform_3(%arg0: i32) -> (i32, i32) {
    %c0_i32 = arith.constant 0 : i32
    %c0_i32_0 = arith.constant 0 : i32
    %c0_i32_1 = arith.constant 0 : i32
    return %c0_i32, %c0_i32_0 : i32, i32
  }
  func.func @transform_4(%arg0: i32) -> (i32, i32) {
    %c0_i32 = arith.constant 0 : i32
    %c0_i32_0 = arith.constant 0 : i32
    %c0_i32_1 = arith.constant 0 : i32
    return %c0_i32, %c0_i32_0 : i32, i32
  }
  func.func @transform_5(%arg0: i32) -> (i32, i32) {
    %c0_i32 = arith.constant 0 : i32
    %c0_i32_0 = arith.constant 0 : i32
    %c0_i32_1 = arith.constant 0 : i32
    return %c0_i32, %c0_i32_0 : i32, i32
  }
  func.func @transform_6(%arg0: i32) -> (i32, i32) {
    %c0_i32 = arith.constant 0 : i32
    %c0_i32_0 = arith.constant 0 : i32
    %c0_i32_1 = arith.constant 0 : i32
    return %c0_i32, %c0_i32_0 : i32, i32
  }
  func.func @transform_7(%arg0: i32) -> (i32, i32) {
    %c0_i32 = arith.constant 0 : i32
    %c0_i32_0 = arith.constant 0 : i32
    %c0_i32_1 = arith.constant 0 : i32
    return %c0_i32, %c0_i32_0 : i32, i32
  }
  func.func @transform_8(%arg0: i32) -> (i32, i32) {
    %c0_i32 = arith.constant 0 : i32
    %c0_i32_0 = arith.constant 0 : i32
    %c0_i32_1 = arith.constant 0 : i32
    return %c0_i32, %c0_i32_0 : i32, i32
  }
  func.func @transform_9(%arg0: i32) -> (i32, i32) {
    %c0_i32 = arith.constant 0 : i32
    %c0_i32_0 = arith.constant 0 : i32
    %c0_i32_1 = arith.constant 0 : i32
    return %c0_i32, %c0_i32_0 : i32, i32
  }
  func.func @transform_10(%arg0: i32) -> (i32, i32) {
    %c0_i32 = arith.constant 0 : i32
    %c0_i32_0 = arith.constant 0 : i32
    %c0_i32_1 = arith.constant 0 : i32
    return %c0_i32, %c0_i32_0 : i32, i32
  }
  func.func @transform_11(%arg0: i32) -> (i32, i32) {
    %c0_i32 = arith.constant 0 : i32
    %c0_i32_0 = arith.constant 0 : i32
    %c0_i32_1 = arith.constant 0 : i32
    return %c0_i32, %c0_i32_0 : i32, i32
  }
  func.func @transform_12(%arg0: i32) -> (i32, i32) {
    %c0_i32 = arith.constant 0 : i32
    %c0_i32_0 = arith.constant 0 : i32
    %c0_i32_1 = arith.constant 0 : i32
    return %c0_i32, %c0_i32_0 : i32, i32
  }
  func.func @transform_13(%arg0: i32) -> (i32, i32) {
    %c0_i32 = arith.constant 0 : i32
    %c0_i32_0 = arith.constant 0 : i32
    %c0_i32_1 = arith.constant 0 : i32
    return %c0_i32, %c0_i32_0 : i32, i32
  }
  func.func @transform_14(%arg0: i32) -> (i32, i32) {
    %c0_i32 = arith.constant 0 : i32
    %c0_i32_0 = arith.constant 0 : i32
    %c0_i32_1 = arith.constant 0 : i32
    return %c0_i32, %c0_i32_0 : i32, i32
  }
  func.func @transform_15(%arg0: i32) -> (i32, i32) {
    %c0_i32 = arith.constant 0 : i32
    %c0_i32_0 = arith.constant 0 : i32
    %c0_i32_1 = arith.constant 0 : i32
    return %c0_i32, %c0_i32_0 : i32, i32
  }
  func.func @transform_16(%arg0: i32) -> (i32, i32) {
    %c0_i32 = arith.constant 0 : i32
    %c0_i32_0 = arith.constant 0 : i32
    return %arg0, %c0_i32 : i32, i32
  }
}

</mosaic_0001>

<bundles_post_ra>
// kernel: tpu_custom_call.1
= control target key start
LH: loop header
LB: loop body
LE: loop exit
PB: predicated region body
PF: predicated region fallthrough
CT: control target
= control target key end

     0   :  { %s2491_s0 = inlined_call_operand.vmem [shape: f32[16,32], index: 0, kind: input, shape index: {}]   ;;  %s2492_s1 = inlined_call_operand.vmem [shape: f32[16,32], index: 1, kind: input, shape index: {}]   ;;  %s2493_s2 = inlined_call_operand.vmem [shape: f32[1,32], index: 2, kind: input, shape index: {}]   ;;  %s2494_s3 = inlined_call_operand.vmem [shape: f32[1,32], index: 3, kind: input, shape index: {}]   ;;  %s2495_s4 = inlined_call_operand.vmem [shape: f32[32,32], index: 4, kind: input, shape index: {}]   ;;  %s2496_s5 = inlined_call_operand.vmem [shape: f32[1,32], index: 5, kind: input, shape index: {}]   ;;  %s2497_s6 = inlined_call_operand.vmem [shape: f32[32,64], index: 6, kind: input, shape index: {}]   ;;  %s2498_s7 = inlined_call_operand.vmem [shape: f32[1,64], index: 7, kind: input, shape index: {}]   ;;  %s2499_s8 = inlined_call_operand.vmem [shape: f32[32,32], index: 8, kind: input, shape index: {}]   ;;  %s2500_s9 = inlined_call_operand.vmem [shape: f32[1,32], index: 9, kind: input, shape index: {}]   ;;  %s2501_s10 = inlined_call_operand.vmem [shape: f32[1,32], index: 10, kind: input, shape index: {}]   ;;  %s2502_s11 = inlined_call_operand.vmem [shape: f32[1,32], index: 11, kind: input, shape index: {}]   ;;  %s2503_s12 = inlined_call_operand.vmem [shape: f32[32,128], index: 12, kind: input, shape index: {}]   ;;  %s2504_s13 = inlined_call_operand.vmem [shape: f32[1,128], index: 13, kind: input, shape index: {}]   ;;  %s2505_s14 = inlined_call_operand.vmem [shape: f32[128,32], index: 14, kind: input, shape index: {}]   ;;  %s2506_s15 = inlined_call_operand.vmem [shape: f32[1,32], index: 15, kind: input, shape index: {}]   ;;  %s2507_s16 = inlined_call_operand.hbm [shape: f32[16,32], index: 16, kind: output, shape index: {}]  }
   0x1   :  { %2509 = sst [smem:[#allocation5_spill]] %s2491_s0 }
   0x2   :  { %s2510_s23 = sld [smem:[#allocation5_spill]]  ;;  %vm60_vm0 = vcmask 261120   ;;  %v56_v1 = vld [vmem:[%s2492_s1] sm:$0xff]  ;;  %v57_v5 = vld [vmem:[%s2492_s1 + $0x8] sm:$0xff] }
   0x3   :  { %v118_v4 = vsel %vm60_vm0, %v56_v1, 0.0 }
   0x4   :  { %119 = vadd.xlane.f32.xlu1 %v118_v4 }
   0x8   :  { %v2157_v0 = vld [vmem:[%s2510_s23] sm:$0xff]  ;;  %v2165_v2 = vld [vmem:[%s2510_s23 + $0x8] sm:$0xff] }
   0x9   :  { %v61_v3 = vsel %vm60_vm0, %v2157_v0, 0.0 }
   0xa   :  { %62 = vadd.xlane.f32.xlu0 %v61_v3 }
   0xb   :  { %21 = vsyncpa [#allocation3], 0  ;;  %v64_v6 = vsel %vm60_vm0, %v2165_v2, 0.0  ;;  %v121_v7 = vsel %vm60_vm0, %v57_v5, 0.0  ;;  %v162_v28 = vld [vmem:[%s2495_s4] sm:$0xff]  ;;  %v163_v29 = vld [vmem:[%s2495_s4 + $0x8] sm:$0xff] }
   0xc   :  { %122 = vadd.xlane.f32.xlu1 %v121_v7  ;;  %v164_v30 = vld [vmem:[%s2495_s4 + $0x10] sm:$0xff]  ;;  %v1832_v31 = vpack.c.bf16 %v163_v29, %v162_v28  ;;  %v165_v32 = vld [vmem:[%s2495_s4 + $0x18] sm:$0xff]  ;;  %v254_v34 = vld [vmem:[%s2497_s6] sm:$0xff]  ;;  %vm374_vm9 = vcmask 64512   ;;  %s2061_s18 = smov 120   ;;  %vm742_vm11 = vcmask 130048  }
   0xd   :  { %v1836_v33 = vpack.c.bf16 %v165_v32, %v164_v30  ;;  %v255_v35 = vld [vmem:[%s2497_s6 + $0x8] sm:$0xff]  ;;  %v1574_v7 = vld [vmem:[%s2493_s2] ss:$0 sm:$0xff]  ;;  %vm2251_vm10 = vmpackc.low %vm374_vm9, %vm374_vm9  ;;  %s2063_s19 = smov 96   ;;  %s2064_s27 = smov 8   ;;  %vm1207_vm15 = vcmask 195584  }
   0xe   :  { %65 = vadd.xlane.f32.xlu0 %v64_v6  ;;  %1833 = vmatprep.subr.bf16.mxu1 %v1832_v31  ;;  %v2216_v36 = vpack.c.bf16 %v255_v35, %v254_v34  ;;  %v1576_v29 = vld [vmem:[%s2496_s5] ss:$0 sm:$0xff]  ;;  %s2060_s5 = smov 112   ;;  %s2065_s28 = smov 16  }
   0xf   :  { %1835 = vmatpush3.bf16.msra.mxu1 %v1832_v31  ;;  %v1579_v32 = vld [vmem:[%s2498_s7] ss:$0 sm:$0xff]  ;;  %s2062_s7 = smov 104  }
  0x10   :  { %1837 = vmatprep.subr.bf16.mxu1 %v1836_v33 }
  0x13   :  { %1839 = vmatpush3.bf16.msra.mxu1 %v1836_v33 }
  0x14   :  { %1841 = vmatprep.subr.bf16.mxu1 %v2216_v36 }
  0x91   :  { %v120_v9 = vpop.xlane.xlu1 %119 }
  0x92   :  { %v124_v11 = vmul.f32 0.03125, %v120_v9 }
  0x94   :  { %v2179_v13 = vsub.f32 %v56_v1, %v124_v11 }
  0x96   :  { %v128_v19 = vmul.f32 %v2179_v13, %v2179_v13 }
  0x97   :  { %v63_v8 = vpop.xlane.xlu0 %62 }
  0x98   :  { %v68_v10 = vmul.f32 0.03125, %v63_v8  ;;  %v130_v25 = vsel %vm60_vm0, %v128_v19, 0.0 }
  0x99   :  { %v123_v15 = vpop.xlane.xlu1 %122 }
  0x9a   :  { %v2177_v12 = vsub.f32 %v2157_v0, %v68_v10  ;;  %v125_v17 = vmul.f32 0.03125, %v123_v15  ;;  %v1575_v10 = vld [vmem:[%s2494_s3] ss:$0 sm:$0xff] }
  0x9b   :  { %v66_v14 = vpop.xlane.xlu0 %65 }
  0x9c   :  { %v69_v16 = vmul.f32 0.03125, %v66_v14  ;;  %v72_v18 = vmul.f32 %v2177_v12, %v2177_v12  ;;  %v2188_v21 = vsub.f32 %v57_v5, %v125_v17  ;;  %v102_v8 = vmul.f32 %v1574_v7, %v2177_v12  ;;  %v257_v12 = vld [vmem:[%s2497_s6 + $0x18] sm:$0xff] }
  0x9e   :  { %v2186_v20 = vsub.f32 %v2165_v2, %v69_v16  ;;  %v74_v22 = vsel %vm60_vm0, %v72_v18, 0.0  ;;  %v129_v24 = vmul.f32 %v2188_v21, %v2188_v21  ;;  %v152_v16 = vmul.f32 %v1574_v7, %v2179_v13  ;;  %v256_v18 = vld [vmem:[%s2497_s6 + $0x10] sm:$0xff] }
  0x9f   :  { %75 = vadd.xlane.f32.xlu0 %v74_v22  ;;  %v153_v13 = vmul.f32 %v1574_v7, %v2188_v21 }
  0xa0   :  { %v73_v23 = vmul.f32 %v2186_v20, %v2186_v20  ;;  %v133_v27 = vsel %vm60_vm0, %v129_v24, 0.0  ;;  %v103_v14 = vmul.f32 %v1574_v7, %v2186_v20 }
  0xa2   :  { %v77_v26 = vsel %vm60_vm0, %v73_v23, 0.0 }
  0xa3   :  { %78 = vadd.xlane.f32.xlu1 %v77_v26  ;;  %131 = vadd.xlane.f32.xlu0 %v130_v25  ;;  %v1844_v25 = vpack.c.bf16 %v257_v12, %v256_v18 }
  0xa7   :  { %134 = vadd.xlane.f32.xlu1 %v133_v27 }
 0x12c   :  { %v76_v37 = vpop.xlane.xlu0 %75 }
 0x12d   :  { %v80_v38 = vmul.f32 0.032258064, %v76_v37 }
 0x12f   :  { %1980 = vrsqrt.f32 %v80_v38  ;;  %vm84_vm1 = vcmp.eq.f32.partialorder %v80_v38, inf  ;;  %v87_v47 = vand.u32 2147483648, %v80_v38  ;;  %vm86_vm2 = vcmp.eq.f32.partialorder %v80_v38, 0.0 }
 0x130   :  { %v79_v39 = vpop.xlane.xlu1 %78  ;;  %v132_v41 = vpop.xlane.xlu0 %131 }
 0x131   :  { %v81_v40 = vmul.f32 0.032258064, %v79_v39  ;;  %v136_v42 = vmul.f32 0.032258064, %v132_v41 }
 0x133   :  { %1982 = vrsqrt.f32 %v81_v40  ;;  %vm91_vm3 = vcmp.eq.f32.partialorder %v81_v40, inf  ;;  %v94_v53 = vand.u32 2147483648, %v81_v40  ;;  %vm93_vm4 = vcmp.eq.f32.partialorder %v81_v40, 0.0 }
 0x134   :  { %1984 = vrsqrt.f32 %v136_v42  ;;  %v135_v43 = vpop.xlane.xlu1 %134  ;;  %vm140_vm5 = vcmp.eq.f32.partialorder %v136_v42, inf  ;;  %v143_v57 = vand.u32 2147483648, %v136_v42  ;;  %vm142_vm6 = vcmp.eq.f32.partialorder %v136_v42, 0.0 }
 0x135   :  { %v137_v44 = vmul.f32 0.032258064, %v135_v43 }
 0x137   :  { %1986 = vrsqrt.f32 %v137_v44  ;;  %vm147_vm7 = vcmp.eq.f32.partialorder %v137_v44, inf  ;;  %v150_v1 = vand.u32 2147483648, %v137_v44  ;;  %vm149_vm8 = vcmp.eq.f32.partialorder %v137_v44, 0.0 }
 0x139   :  { %v1981_v45 = vpop.eup %1980 }
 0x13a   :  { %v83_v46 = vmul.f32 %v1981_v45, %v80_v38 }
 0x13c   :  { %v85_v49 = vsel %vm84_vm1, %v80_v38, %v83_v46 }
 0x13d   :  { %v1983_v48 = vpop.eup %1982  ;;  %v88_v52 = vsel %vm86_vm2, %v87_v47, %v85_v49 }
 0x13e   :  { %v1985_v50 = vpop.eup %1984  ;;  %v90_v51 = vmul.f32 %v1983_v48, %v81_v40  ;;  %v104_v55 = vadd.f32 1e-06, %v88_v52 }
 0x13f   :  { %v139_v54 = vmul.f32 %v1985_v50, %v136_v42 }
 0x140   :  { %v92_v56 = vsel %vm91_vm3, %v81_v40, %v90_v51  ;;  %1988 = vrcp.f32 %v104_v55 }
 0x141   :  { %v1987_v58 = vpop.eup %1986  ;;  %v95_v59 = vsel %vm93_vm4, %v94_v53, %v92_v56  ;;  %v141_v60 = vsel %vm140_vm5, %v136_v42, %v139_v54 }
 0x142   :  { %v144_v61 = vsel %vm142_vm6, %v143_v57, %v141_v60  ;;  %v146_v62 = vmul.f32 %v1987_v58, %v137_v44  ;;  %v105_v63 = vadd.f32 1e-06, %v95_v59  ;;  %v708_v59 = vlaneseq }
 0x143   :  { %v154_v3 = vadd.f32 1e-06, %v144_v61 }
 0x144   :  { %v148_v4 = vsel %vm147_vm7, %v137_v44, %v146_v62  ;;  %1990 = vrcp.f32 %v105_v63  ;;  %v709_v60 = vshrl.u32 %v708_v59, 7  ;;  %v715_v61 = vand.u32 127, %v708_v59 }
 0x145   :  { %v151_v5 = vsel %vm149_vm8, %v150_v1, %v148_v4  ;;  %1992 = vrcp.f32 %v154_v3 }
 0x146   :  { %v155_v6 = vadd.f32 1e-06, %v151_v5  ;;  %vm716_vm12 = vcmp.lt.s32.totalorder %v709_v60, 4  ;;  %vm718_vm13 = vcmp.gt.s32.totalorder %v715_v61, %v709_v60 }
 0x147   :  { %vm2294_vm14 = vmand %vm716_vm12, %vm718_vm13 }
 0x148   :  { %1994 = vrcp.f32 %v155_v6 }
 0x14a   :  { %v1989_v9 = vpop.eup %1988 }
 0x14b   :  { %v107_v11 = vmul.f32 %v1989_v9, %v102_v8 }
 0x14d   :  { %v116_v17 = vadd.f32 %v1575_v10, %v107_v11 }
 0x14e   :  { %v1991_v15 = vpop.eup %1990 }
 0x14f   :  { %v1993_v19 = vpop.eup %1992  ;;  %v109_v22 = vmul.f32 %v1991_v15, %v103_v14  ;;  %1705 = vmatprep.mubr.msk.f32.mxu1 %vm60_vm0, %v116_v17 }
 0x150   :  { %v157_v23 = vmul.f32 %v1993_v19, %v152_v16 }
 0x151   :  { %v117_v24 = vadd.f32 %v1575_v10, %v109_v22 }
 0x152   :  { %v1995_v20 = vpop.eup %1994  ;;  %v160_v26 = vadd.f32 %v1575_v10, %v157_v23 }
 0x153   :  { %1706 = vmatmul.mubr.msk.f32.vlgmr.msra.gmra.mrb[0].mxu1 %vm60_vm0, %v117_v24  ;;  %v159_v27 = vmul.f32 %v1995_v20, %v153_v13 }
 0x154   :  { %1843 = vmatpush3.bf16.msra.mxu1 %v2216_v36  ;;  %1716 = vmatprep.mubr.msk.f32.mxu1 %vm60_vm0, %v160_v26 }
 0x155   :  { %1845 = vmatprep.subr.bf16.mxu1 %v1844_v25  ;;  %v161_v28 = vadd.f32 %v1575_v10, %v159_v27 }
 0x158   :  { %1847 = vmatpush3.bf16.msra.mxu1 %v1844_v25 }
 0x15b   :  { %1717 = vmatmul.mubr.msk.f32.vlgmr.msra.gmra.mrb[2].mxu1 %vm60_vm0, %v161_v28 }
 0x226   :  { %v1707_v30 = vpop.f32.mrb[0].mxu1 }
 0x227   :  { %v245_v31 = vpop.f32.mrb[1].mxu1  ;;  %v251_v40 = vadd.f32 %v1707_v30, %v1576_v29 }
 0x228   :  { %v246_v21 = vadd.f32 %v1576_v29, %v245_v31 }
 0x22a   :  { %1723 = vmatprep.mubr.msk.f32.mxu1 %vm374_vm9, %v246_v21 }
 0x22e   :  { %v1718_v33 = vpop.f32.mrb[2].mxu1 }
 0x22f   :  { %v343_v34 = vadd.f32 %v1718_v33, %v1579_v32  ;;  %v337_v35 = vpop.f32.mrb[3].mxu1 }
 0x230   :  { %v338_v36 = vadd.f32 %v1579_v32, %v337_v35 }
 0x232   :  { %v2247_v37 = vpack.i.bf16 %v343_v34, %v338_v36  ;;  %v1848_v38 = vpack.c.bf16 %v343_v34, %v338_v36 }
 0x234   :  { %1951 = vrot.lane.b32.xlu1 %v2247_v37, %s2060_s5  ;;  %1946 = vrot.lane.b32.xlu0 %v2247_v37, %s2061_s18 }
 0x235   :  { %1850 = vmatprep.subr.msk.bf16.mxu1 %vm2251_vm10, %v1848_v38 }
 0x236   :  { %1853 = vmatpush3.bf16.xpose.msk.msra.mxu1 %vm2251_vm10, %v1848_v38 }
 0x238   :  { %1956 = vrot.lane.b32.xlu1 %v2247_v37, %s2062_s7  ;;  %350 = vrot.lane.b32.xlu0 %v251_v40, %s2061_s18 }
 0x23c   :  { %348 = vrot.lane.b32.xlu1 %v246_v21, %s2061_s18  ;;  %354 = vrot.lane.b32.xlu0 %v251_v40, %s2060_s5 }
 0x23d   :  { %1724 = vmatmul.mubr.msk.f32.vlgmr.msra.gmra.mrb[4].mxu1 %vm374_vm9, %v251_v40 }
 0x240   :  { %352 = vrot.lane.b32.xlu1 %v246_v21, %s2060_s5  ;;  %358 = vrot.lane.b32.xlu0 %v251_v40, %s2062_s7 }
 0x244   :  { %356 = vrot.lane.b32.xlu1 %v246_v21, %s2062_s7 }
 0x2a6   :  { %v2263_v41 = vpop.permute.xlu1 %1951  ;;  %v2265_v42 = vpop.permute.xlu0 %1946 }
 0x2a7   :  { %v1954_v43 = vunpack.i.h.bf16 %v2263_v41  ;;  %v1953_v44 = vunpack.i.l.bf16 %v2263_v41  ;;  %v1949_v45 = vunpack.i.h.bf16 %v2265_v42  ;;  %v1948_v46 = vunpack.i.l.bf16 %v2265_v42 }
 0x2a9   :  { %v1854_v47 = vpack.c.bf16 %v1949_v45, %v1948_v46  ;;  %v1860_v48 = vpack.c.bf16 %v1954_v43, %v1953_v44 }
 0x2aa   :  { %v2271_v49 = vpop.permute.xlu1 %1956  ;;  %v351_v53 = vpop.permute.xlu0 %350 }
 0x2ab   :  { %v1959_v50 = vunpack.i.h.bf16 %v2271_v49  ;;  %v1958_v51 = vunpack.i.l.bf16 %v2271_v49  ;;  %1856 = vmatprep.subr.msk.bf16.mxu1 %vm2251_vm10, %v1854_v47  ;;  %1862 = vmatprep.subr.msk.bf16.mxu0 %vm2251_vm10, %v1860_v48 }
 0x2ac   :  { %1859 = vmatpush3.bf16.xpose.msk.msra.mxu1 %vm2251_vm10, %v1854_v47  ;;  %1865 = vmatpush3.bf16.xpose.msk.msra.mxu0 %vm2251_vm10, %v1860_v48 }
 0x2ad   :  { %v1866_v52 = vpack.c.bf16 %v1959_v50, %v1958_v51 }
 0x2ae   :  { %v349_v54 = vpop.permute.xlu1 %348  ;;  %v355_v56 = vpop.permute.xlu0 %354 }
 0x2af   :  { %1730 = vmatprep.mubr.msk.f32.mxu1 %vm374_vm9, %v349_v54  ;;  %1868 = vmatprep.subr.msk.bf16.mxu1 %vm2251_vm10, %v1866_v52 }
 0x2b2   :  { %v353_v55 = vpop.permute.xlu1 %352  ;;  %v359_v58 = vpop.permute.xlu0 %358 }
 0x2b3   :  { %1731 = vmatmul.mubr.msk.f32.vlgmr.msra.gmra.mrb[6].mxu1 %vm374_vm9, %v351_v53  ;;  %1737 = vmatprep.mubr.msk.f32.mxu0 %vm374_vm9, %v353_v55 }
 0x2b4   :  { %1738 = vmatmul.mubr.msk.f32.vlgmr.msra.gmra.mrb[0].mxu0 %vm374_vm9, %v355_v56  ;;  %1871 = vmatpush3.bf16.xpose.msk.msra.mxu1 %vm2251_vm10, %v1866_v52 }
 0x2b6   :  { %v357_v57 = vpop.permute.xlu1 %356 }
 0x2b7   :  { %1744 = vmatprep.mubr.msk.f32.mxu1 %vm374_vm9, %v357_v57 }
 0x2bb   :  { %1745 = vmatmul.mubr.msk.f32.vlgmr.msra.gmra.mrb[8].mxu1 %vm374_vm9, %v359_v58 }
 0x310   :  { %v1725_v62 = vpop.f32.mrb[4].mxu1 }
 0x311   :  { %v449_v63 = vpop.f32.mrb[5].mxu1  ;;  %v746_v1 = vsel %vm742_vm11, %v1725_v62, -inf }
 0x312   :  { %v1598_v4 = vadd.f32 -1e+09, %v449_v63  ;;  %747 = vmax.xlane.f32.xlu0 %v746_v1 }
 0x314   :  { %v734_v5 = vsel %vm2294_vm14, %v1598_v4, %v449_v63 }
 0x315   :  { %v743_v6 = vsel %vm742_vm11, %v734_v5, -inf }
 0x316   :  { %744 = vmax.xlane.f32.xlu1 %v743_v6 }
 0x386   :  { %v1732_v7 = vpop.f32.mrb[6].mxu1 }
 0x387   :  { %v532_v8 = vpop.f32.mrb[7].mxu1  ;;  %v1739_v9 = vpop.f32.mrb[0].mxu0  ;;  %v752_v10 = vsel %vm742_vm11, %v1732_v7, -inf }
 0x388   :  { %v1600_v11 = vadd.f32 -1e+09, %v532_v8  ;;  %v615_v14 = vpop.f32.mrb[1].mxu0  ;;  %753 = vmax.xlane.f32.xlu0 %v752_v10  ;;  %v758_v23 = vsel %vm742_vm11, %v1739_v9, -inf }
 0x389   :  { %v1602_v15 = vadd.f32 -1e+09, %v615_v14 }
 0x38a   :  { %v736_v16 = vsel %vm2294_vm14, %v1600_v11, %v532_v8 }
 0x38b   :  { %v749_v17 = vsel %vm742_vm11, %v736_v16, -inf  ;;  %v738_v18 = vsel %vm2294_vm14, %v1602_v15, %v615_v14 }
 0x38c   :  { %750 = vmax.xlane.f32.xlu0 %v749_v17  ;;  %v755_v12 = vsel %vm742_vm11, %v738_v18, -inf }
 0x38d   :  { %756 = vmax.xlane.f32.xlu1 %v755_v12 }
 0x38e   :  { %v1746_v19 = vpop.f32.mrb[8].mxu1 }
 0x38f   :  { %v698_v22 = vpop.f32.mrb[9].mxu1  ;;  %v764_v20 = vsel %vm742_vm11, %v1746_v19, -inf }
 0x390   :  { %v1604_v24 = vadd.f32 -1e+09, %v698_v22  ;;  %759 = vmax.xlane.f32.xlu0 %v758_v23 }
 0x392   :  { %v2311_v25 = vsel %vm2294_vm14, %v1604_v24, %v698_v22 }
 0x393   :  { %v761_v26 = vsel %vm742_vm11, %v2311_v25, -inf }
 0x394   :  { %765 = vmax.xlane.f32.xlu0 %v764_v20  ;;  %762 = vmax.xlane.f32.xlu1 %v761_v26 }
 0x39f   :  { %v748_v13 = vpop.xlane.xlu0 %747 }
 0x3a0   :  { %v768_v27 = vsub.f32 %v1725_v62, %v748_v13 }
 0x3a2   :  { %v777_v28 = vmul.f32 1.442695, %v768_v27 }
 0x3a3   :  { %v745_v31 = vpop.xlane.xlu1 %744 }
 0x3a4   :  { %1996 = vpow2.f32 %v777_v28  ;;  %v767_v21 = vsub.f32 %v734_v5, %v745_v31 }
 0x3a5   :  { %1961 = vrot.lane.b32.xlu1 %v2247_v37, %s2063_s19 }
 0x3a6   :  { %v775_v32 = vmul.f32 1.442695, %v767_v21 }
 0x3a8   :  { %1998 = vpow2.f32 %v775_v32 }
 0x3ae   :  { %v2318_v29 = vpop.eup %1996 }
 0x3af   :  { %v794_v30 = vsel %vm742_vm11, %v2318_v29, 0.0 }
 0x3b0   :  { %795 = vadd.xlane.f32.xlu0 %v794_v30 }
 0x3b2   :  { %v1999_v33 = vpop.eup %1998 }
 0x3b3   :  { %v791_v34 = vsel %vm742_vm11, %v1999_v33, 0.0 }
 0x3c9   :  { %792 = vadd.xlane.f32.xlu1 %v791_v34 }
 0x415   :  { %v754_v35 = vpop.xlane.xlu0 %753 }
 0x416   :  { %v770_v36 = vsub.f32 %v1732_v7, %v754_v35 }
 0x418   :  { %v781_v38 = vmul.f32 1.442695, %v770_v36 }
 0x419   :  { %v751_v39 = vpop.xlane.xlu0 %750 }
 0x41a   :  { %2000 = vpow2.f32 %v781_v38  ;;  %v769_v37 = vsub.f32 %v736_v16, %v751_v39  ;;  %v757_v40 = vpop.xlane.xlu1 %756 }
 0x41b   :  { %v771_v43 = vsub.f32 %v738_v18, %v757_v40 }
 0x41c   :  { %v779_v44 = vmul.f32 1.442695, %v769_v37 }
 0x41d   :  { %v783_v45 = vmul.f32 1.442695, %v771_v43  ;;  %v760_v46 = vpop.xlane.xlu0 %759 }
 0x41e   :  { %2002 = vpow2.f32 %v779_v44  ;;  %v772_v47 = vsub.f32 %v1739_v9, %v760_v46 }
 0x41f   :  { %2004 = vpow2.f32 %v783_v45 }
 0x420   :  { %v785_v48 = vmul.f32 1.442695, %v772_v47  ;;  %v1210_v47 = vld [vmem:[%s2499_s8] sm:$0xff] }
 0x421   :  { %v766_v50 = vpop.xlane.xlu0 %765  ;;  %v763_v51 = vpop.xlane.xlu1 %762 }
 0x422   :  { %2006 = vpow2.f32 %v785_v48  ;;  %v774_v52 = vsub.f32 %v1746_v19, %v766_v50  ;;  %v773_v6 = vsub.f32 %v2311_v25, %v763_v51  ;;  %v1211_v48 = vld [vmem:[%s2499_s8 + $0x8] sm:$0xff]  ;;  %v1212_v50 = vld [vmem:[%s2499_s8 + $0x10] sm:$0xff] }
 0x423   :  { %v1888_v51 = vpack.c.bf16 %v1211_v48, %v1210_v47  ;;  %v1466_v47 = vld [vmem:[%s2505_s14 + $0x50] sm:$0xff]  ;;  %v1467_v48 = vld [vmem:[%s2505_s14 + $0x58] sm:$0xff] }
 0x424   :  { %v2323_v53 = vpop.eup %2000  ;;  %v789_v54 = vmul.f32 1.442695, %v774_v52  ;;  %v787_v7 = vmul.f32 1.442695, %v773_v6  ;;  %v1213_v52 = vld [vmem:[%s2499_s8 + $0x18] sm:$0xff]  ;;  %s2066_s8 = smov 24  }
 0x425   :  { %v1962_v55 = vpop.permute.xlu1 %1961  ;;  %v800_v56 = vsel %vm742_vm11, %v2323_v53, 0.0 }
 0x426   :  { %2008 = vpow2.f32 %v789_v54  ;;  %v1964_v57 = vunpack.i.h.bf16 %v1962_v55  ;;  %v1963_v58 = vunpack.i.l.bf16 %v1962_v55  ;;  %801 = vadd.xlane.f32.xlu0 %v800_v56 }
 0x427   :  { %2010 = vpow2.f32 %v787_v7 }
 0x428   :  { %v2003_v59 = vpop.eup %2002  ;;  %v1872_v60 = vpack.c.bf16 %v1964_v57, %v1963_v58 }
 0x429   :  { %v797_v61 = vsel %vm742_vm11, %v2003_v59, 0.0  ;;  %v2005_v62 = vpop.eup %2004 }
 0x42a   :  { %798 = vadd.xlane.f32.xlu1 %v797_v61  ;;  %1873 = vmatprep.subr.bf16.mxu0 %v1872_v60  ;;  %v803_v3 = vsel %vm742_vm11, %v2005_v62, 0.0 }
 0x42b   :  { %1875 = vmatpush3.bf16.msra.mxu0 %v1872_v60 }
 0x42c   :  { %v2007_v63 = vpop.eup %2006 }
 0x42d   :  { %v806_v1 = vsel %vm742_vm11, %v2007_v63, 0.0 }
 0x42e   :  { %807 = vadd.xlane.f32.xlu0 %v806_v1  ;;  %804 = vadd.xlane.f32.xlu1 %v803_v3 }
 0x430   :  { %v2330_v4 = vpop.eup %2008 }
 0x431   :  { %v812_v5 = vsel %vm742_vm11, %v2330_v4, 0.0  ;;  %v2011_v10 = vpop.eup %2010 }
 0x432   :  { %813 = vadd.xlane.f32.xlu0 %v812_v5  ;;  %v809_v15 = vsel %vm742_vm11, %v2011_v10, 0.0 }
 0x43d   :  { %v796_v8 = vpop.xlane.xlu0 %795 }
 0x43e   :  { %2012 = vrcp.f32 %v796_v8 }
 0x43f   :  { %1971 = vrot.lane.b32.xlu1 %v2263_v41, %s2063_s19 }
 0x448   :  { %1966 = vrot.lane.b32.xlu0 %v2265_v42, %s2063_s19  ;;  %v2013_v11 = vpop.eup %2012 }
 0x449   :  { %v824_v17 = vmul.f32 %v2013_v11, %v2318_v29 }
 0x456   :  { %v793_v9 = vpop.xlane.xlu1 %792 }
 0x457   :  { %2014 = vrcp.f32 %v793_v9 }
 0x461   :  { %v2015_v14 = vpop.eup %2014 }
 0x462   :  { %v823_v16 = vmul.f32 %v2015_v14, %v1999_v33 }
 0x463   :  { %810 = vadd.xlane.f32.xlu1 %v809_v15 }
 0x464   :  { %1751 = vmatprep.mubr.msk.f32.mxu0 %vm742_vm11, %v823_v16 }
 0x465   :  { %1752 = vmatmul.mubr.msk.f32.vlgmr.msra.gmra.mrb[2].mxu0 %vm742_vm11, %v824_v17 }
 0x474   :  { %1976 = vrot.lane.b32.xlu1 %v2271_v49, %s2063_s19 }
 0x4b3   :  { %v802_v41 = vpop.xlane.xlu0 %801 }
 0x4b7   :  { %v799_v42 = vpop.xlane.xlu1 %798 }
 0x4b8   :  { %2016 = vrcp.f32 %v799_v42 }
 0x4b9   :  { %2018 = vrcp.f32 %v802_v41 }
 0x4bb   :  { %v808_v18 = vpop.xlane.xlu0 %807  ;;  %v805_v12 = vpop.xlane.xlu1 %804 }
 0x4bc   :  { %2020 = vrcp.f32 %v808_v18 }
 0x4bd   :  { %2022 = vrcp.f32 %v805_v12 }
 0x4bf   :  { %v814_v19 = vpop.xlane.xlu0 %813  ;;  %v1972_v22 = vpop.permute.xlu1 %1971 }
 0x4c0   :  { %v1974_v23 = vunpack.i.h.bf16 %v1972_v22  ;;  %v1973_v24 = vunpack.i.l.bf16 %v1972_v22  ;;  %2024 = vrcp.f32 %v814_v19 }
 0x4c2   :  { %v2017_v25 = vpop.eup %2016  ;;  %v1880_v20 = vpack.c.bf16 %v1974_v23, %v1973_v24 }
 0x4c3   :  { %v1967_v26 = vpop.permute.xlu0 %1966  ;;  %v825_v13 = vmul.f32 %v2017_v25, %v2003_v59  ;;  %v2019_v49 = vpop.eup %2018 }
 0x4c4   :  { %v1969_v27 = vunpack.i.h.bf16 %v1967_v26  ;;  %v1968_v28 = vunpack.i.l.bf16 %v1967_v26  ;;  %1881 = vmatprep.subr.bf16.mxu0 %v1880_v20  ;;  %v826_v33 = vmul.f32 %v2019_v49, %v2323_v53  ;;  %v1892_v53 = vpack.c.bf16 %v1213_v52, %v1212_v50  ;;  %v1469_v52 = vld [vmem:[%s2505_s14 + $0x68] sm:$0xff] }
 0x4c5   :  { %1758 = vmatprep.mubr.msk.f32.mxu1 %vm742_vm11, %v825_v13  ;;  %1883 = vmatpush3.bf16.msra.mxu0 %v1880_v20  ;;  %v1362_v13 = vld [vmem:[%s2503_s12] sm:$0xff]  ;;  %v1924_v50 = vpack.c.bf16 %v1467_v48, %v1466_v47 }
 0x4c6   :  { %v2021_v29 = vpop.eup %2020  ;;  %v1876_v30 = vpack.c.bf16 %v1969_v27, %v1968_v28  ;;  %1889 = vmatprep.subr.bf16.mxu0 %v1888_v51  ;;  %v1363_v27 = vld [vmem:[%s2503_s12 + $0x8] sm:$0xff]  ;;  %v1364_v28 = vld [vmem:[%s2503_s12 + $0x10] sm:$0xff] }
 0x4c7   :  { %v2023_v31 = vpop.eup %2022  ;;  %v828_v21 = vmul.f32 %v2021_v29, %v2007_v63  ;;  %v1896_v49 = vpack.c.bf16 %v1363_v27, %v1362_v13  ;;  %v1365_v29 = vld [vmem:[%s2503_s12 + $0x18] sm:$0xff]  ;;  %v1622_v27 = vld [vmem:[%s2506_s15] ss:$0 sm:$0xff] }
 0x4c8   :  { %1877 = vmatprep.subr.bf16.mxu1 %v1876_v30  ;;  %v827_v32 = vmul.f32 %v2023_v31, %v2005_v62  ;;  %v1456_v31 = vld [vmem:[%s2505_s14] sm:$0xff] }
 0x4c9   :  { %1879 = vmatpush3.bf16.msra.mxu1 %v1876_v30  ;;  %v1900_v30 = vpack.c.bf16 %v1365_v29, %v1364_v28 }
 0x4ca   :  { %1765 = vmatprep.mubr.msk.f32.mxu0 %vm742_vm11, %v827_v32  ;;  %v2025_v37 = vpop.eup %2024  ;;  %v1458_v32 = vld [vmem:[%s2505_s14 + $0x10] sm:$0xff] }
 0x4cb   :  { %1766 = vmatmul.mubr.msk.f32.vlgmr.msra.gmra.mrb[4].mxu0 %vm742_vm11, %v828_v21  ;;  %v830_v44 = vmul.f32 %v2025_v37, %v2330_v4  ;;  %v1457_v21 = vld [vmem:[%s2505_s14 + $0x8] sm:$0xff]  ;;  %v1462_v37 = vld [vmem:[%s2505_s14 + $0x30] sm:$0xff] }
 0x4cc   :  { %1759 = vmatmul.mubr.msk.f32.vlgmr.msra.gmra.mrb[10].mxu1 %vm742_vm11, %v826_v33  ;;  %1891 = vmatpush3.bf16.msra.mxu0 %v1888_v51  ;;  %v1904_v33 = vpack.c.bf16 %v1457_v21, %v1456_v31  ;;  %v1468_v51 = vld [vmem:[%s2505_s14 + $0x60] sm:$0xff] }
 0x4cd   :  { %1893 = vmatprep.subr.bf16.mxu0 %v1892_v53 }
 0x4d0   :  { %1895 = vmatpush3.bf16.msra.mxu0 %v1892_v53  ;;  %v1928_v53 = vpack.c.bf16 %v1469_v52, %v1468_v51 }
 0x4d1   :  { %1905 = vmatprep.subr.bf16.mxu0 %v1904_v33 }
 0x4f0   :  { %v811_v34 = vpop.xlane.xlu1 %810 }
 0x4f1   :  { %2026 = vrcp.f32 %v811_v34  ;;  %v1459_v34 = vld [vmem:[%s2505_s14 + $0x18] sm:$0xff] }
 0x4f4   :  { %v1977_v35 = vpop.permute.xlu1 %1976 }
 0x4f5   :  { %v1979_v36 = vunpack.i.h.bf16 %v1977_v35  ;;  %v1978_v38 = vunpack.i.l.bf16 %v1977_v35  ;;  %v1908_v35 = vpack.c.bf16 %v1459_v34, %v1458_v32 }
 0x4f7   :  { %v1884_v39 = vpack.c.bf16 %v1979_v36, %v1978_v38  ;;  %v1460_v36 = vld [vmem:[%s2505_s14 + $0x20] sm:$0xff]  ;;  %v1461_v38 = vld [vmem:[%s2505_s14 + $0x28] sm:$0xff] }
 0x4f9   :  { %1885 = vmatprep.subr.bf16.mxu1 %v1884_v39 }
 0x4fa   :  { %1887 = vmatpush3.bf16.msra.mxu1 %v1884_v39  ;;  %v1912_v39 = vpack.c.bf16 %v1461_v38, %v1460_v36 }
 0x4fb   :  { %v2027_v40 = vpop.eup %2026  ;;  %1897 = vmatprep.subr.bf16.mxu1 %v1896_v49 }
 0x4fc   :  { %v829_v43 = vmul.f32 %v2027_v40, %v2011_v10  ;;  %v1614_v10 = vld [vmem:[%s2500_s9] ss:$0 sm:$0xff]  ;;  %v1463_v40 = vld [vmem:[%s2505_s14 + $0x38] sm:$0xff] }
 0x4fe   :  { %1772 = vmatprep.mubr.msk.f32.mxu1 %vm742_vm11, %v829_v43  ;;  %v1916_v43 = vpack.c.bf16 %v1463_v40, %v1462_v37 }
 0x4ff   :  { %1773 = vmatmul.mubr.msk.f32.vlgmr.msra.gmra.mrb[12].mxu1 %vm742_vm11, %v830_v44  ;;  %v1464_v44 = vld [vmem:[%s2505_s14 + $0x40] sm:$0xff] }
 0x500   :  { %1899 = vmatpush3.bf16.msra.mxu1 %v1896_v49 }
 0x501   :  { %1901 = vmatprep.subr.bf16.mxu1 %v1900_v30 }
 0x504   :  { %1903 = vmatpush3.bf16.msra.mxu1 %v1900_v30 }
 0x538   :  { %v1753_v45 = vpop.f32.mrb[2].mxu0 }
 0x539   :  { %v909_v46 = vpop.f32.mrb[3].mxu0 }
 0x59e   :  { %v1767_v54 = vpop.f32.mrb[4].mxu0 }
 0x59f   :  { %v1083_v55 = vpop.f32.mrb[5].mxu0  ;;  %v1760_v56 = vpop.f32.mrb[10].mxu1 }
 0x5a0   :  { %1183 = vrot.lane.b32.xlu0 %v1760_v56, %s2064_s27  ;;  %v996_v57 = vpop.f32.mrb[11].mxu1 }
 0x5a1   :  { %1181 = vrot.lane.b32.xlu1 %v996_v57, %s2064_s27 }
 0x5a4   :  { %1191 = vrot.lane.b32.xlu0 %v1767_v54, %s2065_s28 }
 0x5a5   :  { %1189 = vrot.lane.b32.xlu1 %v1083_v55, %s2065_s28 }
 0x5d2   :  { %v1774_v58 = vpop.f32.mrb[12].mxu1 }
 0x5d3   :  { %v1170_v59 = vpop.f32.mrb[13].mxu1  ;;  %1199 = vrot.lane.b32.xlu0 %v1774_v58, %s2066_s8 }
 0x5d4   :  { %1197 = vrot.lane.b32.xlu1 %v1170_v59, %s2066_s8 }
 0x612   :  { %v1184_v60 = vpop.permute.xlu0 %1183 }
 0x613   :  { %v1182_v61 = vpop.permute.xlu1 %1181  ;;  %v1204_v4 = vsel %vm374_vm9, %v1753_v45, %v1184_v60  ;;  %v1465_v45 = vld [vmem:[%s2505_s14 + $0x48] sm:$0xff] }
 0x614   :  { %v1203_v1 = vsel %vm374_vm9, %v909_v46, %v1182_v61  ;;  %v1920_v46 = vpack.c.bf16 %v1465_v45, %v1464_v44 }
 0x616   :  { %v1192_v62 = vpop.permute.xlu0 %1191 }
 0x617   :  { %v1190_v63 = vpop.permute.xlu1 %1189  ;;  %v1206_v7 = vsel %vm742_vm11, %v1204_v4, %v1192_v62 }
 0x618   :  { %v1205_v5 = vsel %vm742_vm11, %v1203_v1, %v1190_v63 }
 0x645   :  { %v1200_v3 = vpop.permute.xlu0 %1199 }
 0x646   :  { %v1198_v6 = vpop.permute.xlu1 %1197  ;;  %v1209_v9 = vsel %vm1207_vm15, %v1206_v7, %v1200_v3 }
 0x647   :  { %v1208_v8 = vsel %vm1207_vm15, %v1205_v5, %v1198_v6 }
 0x648   :  { %1783 = vmatprep.mubr.msk.f32.mxu0 %vm60_vm0, %v1208_v8  ;;  %v1617_v8 = vld [vmem:[%s2501_s10] ss:$0 sm:$0xff] }
 0x649   :  { %1784 = vmatmul.mubr.msk.f32.vlgmr.msra.gmra.mrb[6].mxu0 %vm60_vm0, %v1209_v9 }
 0x64a   :  { %1907 = vmatpush3.bf16.msra.mxu0 %v1904_v33 }
 0x64b   :  { %1909 = vmatprep.subr.bf16.mxu0 %v1908_v35 }
 0x64e   :  { %1911 = vmatpush3.bf16.msra.mxu0 %v1908_v35 }
 0x64f   :  { %1913 = vmatprep.subr.bf16.mxu0 %v1912_v39 }
 0x652   :  { %1915 = vmatpush3.bf16.msra.mxu0 %v1912_v39 }
 0x653   :  { %1917 = vmatprep.subr.bf16.mxu0 %v1916_v43 }
 0x656   :  { %1919 = vmatpush3.bf16.msra.mxu0 %v1916_v43 }
 0x657   :  { %1921 = vmatprep.subr.bf16.mxu0 %v1920_v46 }
 0x65a   :  { %1923 = vmatpush3.bf16.msra.mxu0 %v1920_v46 }
 0x65b   :  { %1925 = vmatprep.subr.bf16.mxu0 %v1924_v50 }
 0x65e   :  { %1927 = vmatpush3.bf16.msra.mxu0 %v1924_v50 }
 0x65f   :  { %1929 = vmatprep.subr.bf16.mxu0 %v1928_v53 }
 0x662   :  { %1931 = vmatpush3.bf16.msra.mxu0 %v1928_v53 }
 0x71c   :  { %v1785_v11 = vpop.f32.mrb[6].mxu0 }
 0x71d   :  { %v1299_v14 = vadd.f32 %v1785_v11, %v1614_v10  ;;  %v1293_v15 = vpop.f32.mrb[7].mxu0  ;;  %v1618_v11 = vld [vmem:[%s2502_s11] ss:$0 sm:$0xff] }
 0x71e   :  { %v1294_v16 = vadd.f32 %v1614_v10, %v1293_v15 }
 0x71f   :  { %v2377_v17 = vadd.f32 %v1299_v14, %v2165_v2 }
 0x720   :  { %v2380_v41 = vadd.f32 %v1294_v16, %v2157_v0 }
 0x721   :  { %v1309_v42 = vsel %vm60_vm0, %v2377_v17, 0.0 }
 0x722   :  { %1310 = vadd.xlane.f32.xlu0 %v1309_v42  ;;  %v1306_v18 = vsel %vm60_vm0, %v2380_v41, 0.0 }
 0x723   :  { %1307 = vadd.xlane.f32.xlu1 %v1306_v18 }
 0x7af   :  { %v1311_v12 = vpop.xlane.xlu0 %1310 }
 0x7b0   :  { %v1313_v19 = vmul.f32 0.03125, %v1311_v12  ;;  %v1308_v22 = vpop.xlane.xlu1 %1307 }
 0x7b1   :  { %v1312_v23 = vmul.f32 0.03125, %v1308_v22  ;;  %v1471_v22 = vld [vmem:[%s2505_s14 + $0x78] sm:$0xff] }
 0x7b2   :  { %v2387_v24 = vsub.f32 %v2377_v17, %v1313_v19  ;;  %v1470_v19 = vld [vmem:[%s2505_s14 + $0x70] sm:$0xff]  ;;  %s2067_s14 = smov [#allocation2]  }
 0x7b3   :  { %v2390_v2 = vsub.f32 %v2380_v41, %v1312_v23  ;;  %v1932_v23 = vpack.c.bf16 %v1471_v22, %v1470_v19  ;;  %s1563_s29 = sshll.u32 %s2067_s14, 4  ;;  %s1564_s29 = int_to_ptr.vmem [resolvable:$true] %s1563_s29 }
 0x7b4   :  { %v1317_v20 = vmul.f32 %v2387_v24, %v2387_v24  ;;  %v1347_v15 = vmul.f32 %v1617_v8, %v2387_v24  ;;  %v1619_v24 = vld [vmem:[%s2504_s13] ss:$0 sm:$0xff]  ;;  %s2036_s13 = scalar_lea.vmem %s1564_s29, 256  ;;  %p2041_p1 = scmp.lt.s32.totalorder %s1564_s29, %s1564_s29 }
 0x7b5   :  { %v1316_v0 = vmul.f32 %v2390_v2, %v2390_v2  ;;  %v1346_v9 = vmul.f32 %v1617_v8, %v2390_v2  ;;  %1933 = vmatprep.subr.bf16.mxu0 %v1932_v23  ;;  %p2037_p0 = scmp.ne.s32.totalorder %s1564_s29, %s2036_s13  ;;  %p2042_p2 = scmp.lt.s32.totalorder %s2036_s13, %s2036_s13 }
 0x7b6   :  { %v1321_v26 = vsel %vm60_vm0, %v1317_v20, 0.0  ;;  %1935 = vmatpush3.bf16.msra.mxu0 %v1932_v23 }
 0x7b7   :  { %v1318_v25 = vsel %vm60_vm0, %v1316_v0, 0.0  ;;  %p2043_p3 = por %p2042_p2, %p2041_p1 }
 0x7b8   :  { %1319 = vadd.xlane.f32.xlu0 %v1318_v25 }
 0x7b9   :  { %p2044_p4 = pnand %p2043_p3, %p2037_p0 }
 0x7bc   :  { %1322 = vadd.xlane.f32.xlu0 %v1321_v26 }
 0x845   :  { %v1320_v54 = vpop.xlane.xlu0 %1319 }
 0x846   :  { %v1324_v55 = vmul.f32 0.032258064, %v1320_v54 }
 0x848   :  { %2028 = vrsqrt.f32 %v1324_v55  ;;  %vm1328_vm1 = vcmp.eq.f32.partialorder %v1324_v55, inf  ;;  %v1331_v60 = vand.u32 2147483648, %v1324_v55  ;;  %vm1330_vm2 = vcmp.eq.f32.partialorder %v1324_v55, 0.0 }
 0x849   :  { %v1323_v56 = vpop.xlane.xlu0 %1322 }
 0x84a   :  { %v1325_v57 = vmul.f32 0.032258064, %v1323_v56 }
 0x84c   :  { %2030 = vrsqrt.f32 %v1325_v57  ;;  %vm1335_vm3 = vcmp.eq.f32.partialorder %v1325_v57, inf  ;;  %v1338_v4 = vand.u32 2147483648, %v1325_v57  ;;  %vm1337_vm4 = vcmp.eq.f32.partialorder %v1325_v57, 0.0 }
 0x852   :  { %v2029_v58 = vpop.eup %2028 }
 0x853   :  { %v1327_v59 = vmul.f32 %v2029_v58, %v1324_v55 }
 0x855   :  { %v1329_v61 = vsel %vm1328_vm1, %v1324_v55, %v1327_v59 }
 0x856   :  { %v2031_v62 = vpop.eup %2030  ;;  %v1332_v63 = vsel %vm1330_vm2, %v1331_v60, %v1329_v61 }
 0x857   :  { %v1334_v1 = vmul.f32 %v2031_v62, %v1325_v57  ;;  %v1348_v3 = vadd.f32 1e-06, %v1332_v63 }
 0x859   :  { %v1336_v5 = vsel %vm1335_vm3, %v1325_v57, %v1334_v1  ;;  %2032 = vrcp.f32 %v1348_v3 }
 0x85a   :  { %v1339_v6 = vsel %vm1337_vm4, %v1338_v4, %v1336_v5 }
 0x85b   :  { %v1349_v7 = vadd.f32 1e-06, %v1339_v6 }
 0x85d   :  { %2034 = vrcp.f32 %v1349_v7 }
 0x863   :  { %v2033_v10 = vpop.eup %2032 }
 0x864   :  { %v1351_v14 = vmul.f32 %v2033_v10, %v1346_v9 }
 0x866   :  { %v1360_v16 = vadd.f32 %v1618_v11, %v1351_v14 }
 0x867   :  { %v2035_v42 = vpop.eup %2034 }
 0x868   :  { %v1353_v18 = vmul.f32 %v2035_v42, %v1347_v15  ;;  %1794 = vmatprep.mubr.msk.f32.mxu1 %vm60_vm0, %v1360_v16 }
 0x86a   :  { %v1361_v12 = vadd.f32 %v1618_v11, %v1353_v18 }
 0x86c   :  { %1795 = vmatmul.mubr.msk.f32.vlgmr.msra.gmra.mrb[14].mxu1 %vm60_vm0, %v1361_v12 }
 0x93f   :  { %v1796_v2 = vpop.f32.mrb[14].mxu1 }
 0x940   :  { %v1451_v0 = vadd.f32 %v1796_v2, %v1619_v24  ;;  %v1445_v25 = vpop.f32.mrb[15].mxu1 }
 0x941   :  { %v1446_v20 = vadd.f32 %v1619_v24, %v1445_v25 }
 0x942   :  { %v1455_v13 = vmax.f32 %v1451_v0, 0.0 }
 0x943   :  { %v1454_v26 = vmax.f32 %v1446_v20, 0.0 }
 0x945   :  { %1829 = vmatprep.mubr.f32.mxu0 %v1454_v26 }
 0x946   :  { %1830 = vmatmul.mubr.f32.vlgmr.msra.gmra.mrb[8].mxu0 %v1455_v13 }
 0xa19   :  { %v1831_v28 = vpop.f32.mrb[8].mxu0 }
 0xa1a   :  { %v1551_v49 = vadd.f32 %v1831_v28, %v1622_v27  ;;  %v1545_v29 = vpop.f32.mrb[9].mxu0 }
 0xa1b   :  { %v1546_v30 = vadd.f32 %v1622_v27, %v1545_v29 }
 0xa1c   :  { %v1555_v31 = vadd.f32 %v1551_v49, %v2377_v17 }
 0xa1d   :  { %v1554_v21 = vadd.f32 %v1546_v30, %v2380_v41 }
 0xa1e   :  { %1557 = vst.msk [vmem:[#allocation2 + $0x8] sm:$0xff] %vm60_vm0, %v1555_v31 }
 0xa1f   :  { %1556 = vst.msk [vmem:[#allocation2] sm:$0xff] %vm60_vm0, %v1554_v21 }
 0xa20   :  { %2047 = shalt.err (!%p2044_p4)
}
 0xa21   :  { %s2048_s9 = scalar_lea.hbm %s2507_s16, 256 }
 0xa22   :  { %p2049_p5 = scmp.ne.s32.totalorder %s2507_s16, %s2048_s9  ;;  %p2052_p6 = scmp.lt.u32.totalorder %s2048_s9, %s2507_s16 }
 0xa24   :  { %p2054_p7 = pnand %p2052_p6, %p2049_p5 }
 0xa26   :  { %2057 = shalt.err (!%p2054_p7)
}
 0xa27   :  { %s2068_s0 = smov 128  }
 0xa28   :  { %1569 = dma.vmem_to_hbm [thread:$0]  %s1564_s29, 256, %s2507_s16, [#allocation3], %s2068_s0, %s2068_s0, %s2064_s27  }
 0xa29   :  { %2058 = dma.done.wait [#allocation3], 256  }
 0xa2a   :  { %2059 = vsyncadd [#allocation3], 4294967040 }
 0xa2b   :  { %1573 = vsyncpa [#allocation3], 1 }

</bundles_post_ra>
